<compile_context>
chip_gen: v6e
topology: v6e:2x2x1
jax: 0.10.0
libtpu: 0.0.40
codegen_flags: <defaults>
</compile_context>

<pallas_src>
import functools
import math

import jax
import jax.numpy as jnp
from jax.experimental import pallas as pl
from jax.experimental.pallas import tpu as pltpu

_MASK_VALUE = -1e30  # large finite negative: robust for fully-masked rows


def _self_attention_kernel(
    q_ref, k_ref, v_ref, mask_ref,
    wq_ref, bq_ref, wk_ref, wv_ref, bv_ref,
    attn_ref, out_ref,
    k_scr, v_scr,
    *, approx_recip,
):
    nb, tq, dqp = q_ref.shape
    _, lkp, dvp = v_ref.shape
    cdt = q_ref.dtype  # compute dtype chosen by the wrapper (bf16 or f32)

    # --- K/V projections: once per batch-block, cached in VMEM scratch -------
    # The q grid axis (axis 1) is 'arbitrary', so the scratch persists across
    # all q-tiles of the current batch-block.
    @pl.when(pl.program_id(1) == 0)
    def _():
        k2 = jnp.dot(k_ref[...].reshape(nb * lkp, dqp), wk_ref[...],
                     preferred_element_type=jnp.float32)
        v2 = jnp.dot(v_ref[...].reshape(nb * lkp, dvp), wv_ref[...],
                     preferred_element_type=jnp.float32) + bv_ref[...]
        k_scr[...] = k2.reshape(nb, lkp, dqp).astype(cdt)
        v_scr[...] = v2.reshape(nb, lkp, dvp).astype(cdt)

    # --- Q projection (per q-tile; 1/sqrt(D) folded into Wq/bq) --------------
    q2 = jnp.dot(q_ref[...].reshape(nb * tq, dqp), wq_ref[...],
                 preferred_element_type=jnp.float32) + bq_ref[...]
    q3 = q2.reshape(nb, tq, dqp).astype(cdt)

    # --- logits (NT matmul: contract minor dims, no k transpose on the XLU) --
    logits = jnp.einsum("bqd,bkd->bqk", q3, k_scr[...],
                        preferred_element_type=jnp.float32)
    logits = jnp.where(mask_ref[...] != 0, _MASK_VALUE, logits)

    # --- softmax (f32) --------------------------------------------------------
    m = jnp.max(logits, axis=-1, keepdims=True)
    e = jnp.exp(logits - m)
    denom = jnp.sum(e, axis=-1, keepdims=True)
    if approx_recip:
        attn = e * pl.reciprocal(denom, approx=True)   # EUP slot, ~free
    else:
        attn = e / denom                                # bit-strict f32 path

    # One cast: the stored attention matrix is the same tensor fed to attn@V.
    attn_c = attn.astype(cdt)
    # TODO(synk): nn.Dropout is identity in eval mode; training-time stochastic
    # dropout is not applied here.
    out = jnp.einsum("bqk,bkd->bqd", attn_c, v_scr[...],
                     preferred_element_type=jnp.float32)

    attn_ref[...] = attn_c.astype(attn_ref.dtype)
    out_ref[...] = out.astype(out_ref.dtype)


def _round_up(n, m):
    return ((n + m - 1) // m) * m


def _pad_to(x, axis, size, value=0):
    pad = size - x.shape[axis]
    if pad == 0:
        return x
    widths = [(0, 0)] * x.ndim
    widths[axis] = (0, pad)
    return jnp.pad(x, widths, constant_values=value)


def _tpu_vmem_and_mxu():
    """(vmem_capacity_bytes, mxu_width) with conservative fallbacks."""
    try:
        vmem = int(pltpu.get_tpu_info().vmem_capacity_bytes)
    except Exception:
        vmem = 64 * 1024 * 1024   # conservative default (v7x-sized VMEM)
    try:
        kind = jax.devices()[0].device_kind.lower()
    except Exception:
        kind = ""
    mxu = 128 if "v5" in kind else 256   # v5e: 4x128^2 MXU; v6e/v7x: 2x256^2
    return vmem, mxu


def _vmem_estimate(block_b, block_q, lk_p, dq_p, dv_p, cbytes, out_bytes):
    """Rough per-step VMEM footprint of the double-buffered pipeline."""
    q_in = 2 * block_b * block_q * dq_p * cbytes
    kv_in = 2 * block_b * lk_p * (dq_p + dv_p) * cbytes
    m_in = 2 * block_b * block_q * lk_p                          # int8 mask
    wgt = 2 * ((2 * dq_p * dq_p + dv_p * dv_p) * cbytes + (dq_p + dv_p) * 4)
    attn_o = 2 * block_b * block_q * lk_p * out_bytes
    out_o = 2 * block_b * block_q * dv_p * out_bytes
    scr = block_b * lk_p * (dq_p + dv_p) * cbytes                # projected K/V
    live = 4 * block_b * block_q * lk_p * 4                      # logits/e/attn f32 (+slack)
    return q_in + kv_in + m_in + wgt + attn_o + out_o + scr + live


def _choose_blocks(B, Lq, lk_p, dq_p, dv_p, cbytes, out_bytes, budget, target_q):
    lq8 = _round_up(Lq, 8)
    if lq8 <= target_q:
        # One q-tile covers the (padded) sequence; smaller multiples of 32 are
        # fallbacks if the VMEM budget is tight (huge Lk).
        q_cands = [lq8] + [c for c in (128, 64, 32) if c < lq8]
    else:
        q_cands = [c for c in (256, 128, 64, 32) if c <= target_q]
    block_q = q_cands[-1]
    for c in q_cands:
        if _vmem_estimate(1, c, lk_p, dq_p, dv_p, cbytes, out_bytes) <= budget:
            block_q = c
            break
    block_b = 1
    # Pack batches only when a single q-tile already covers the sequence
    # (amortizes per-step overhead on small-Lq shapes).
    if block_q >= lq8:
        while (block_b * 2 <= B and B % (block_b * 2) == 0
               and block_b * 2 * block_q <= max(target_q, block_q)
               and _vmem_estimate(block_b * 2, block_q, lk_p, dq_p, dv_p,
                                  cbytes, out_bytes) <= budget):
            block_b *= 2
    return block_b, block_q


def self_attention(query, key, value, mask, params, *,
                   compute_dtype=jnp.bfloat16, block_b=None, block_q=None):
    """query: (B, Lq, Dq), key: (B, Lk, Dk), value: (B, Lk, Dv),
    mask: (B, Lq, Lk) bool (True == masked). Returns (attn, output)."""
    B, Lq, Dq = query.shape
    _, Lk, Dk = key.shape
    _, _, Dv = value.shape
    assert Dq == Dk, "bmm(query, key^T) requires matching feature dims"

    cdt = jnp.dtype(compute_dtype)
    cbytes = cdt.itemsize
    out_dtype = cdt                # bf16 attn/out on the fast path, f32 strict
    out_bytes = jnp.dtype(out_dtype).itemsize
    approx = cdt != jnp.dtype(jnp.float32)

    # nn.Linear stores weight as (out, in); pre-transpose so the kernel does
    # x @ W^T, and fold 1/sqrt(Dq) into the query projection weights/bias.
    inv_scale = 1.0 / math.sqrt(float(Dq))
    wq_t = params["q_W.weight"].T * inv_scale
    bq = params["q_W.bias"] * inv_scale
    wk_t = params["k_W.weight"].T
    wv_t = params["v_W.weight"].T
    bv = params["v_W.bias"]

    # Pad lane dims to multiples of 128 / sublane dims to multiples of 8.
    dq_p = _round_up(Dq, 128)
    dv_p = _round_up(Dv, 128)
    lk_p = _round_up(Lk, 128)     # Lk is the lane dim of mask/attn

    vmem_cap, target_q = _tpu_vmem_and_mxu()
    budget = int(0.7 * vmem_cap)
    auto_b, auto_q = _choose_blocks(B, Lq, lk_p, dq_p, dv_p, cbytes, out_bytes,
                                    budget, target_q)
    if block_b is None:
        block_b = auto_b
    if block_q is None:
        block_q = auto_q
    assert B % block_b == 0 and block_q % 8 == 0
    lq_p = _round_up(_round_up(Lq, 8), block_q)

    q_p = _pad_to(_pad_to(query, 2, dq_p), 1, lq_p).astype(cdt)
    k_p = _pad_to(_pad_to(key, 2, dq_p), 1, lk_p).astype(cdt)
    v_p = _pad_to(_pad_to(value, 2, dv_p), 1, lk_p).astype(cdt)
    # int8 mask (1 == masked); padded keys/queries are marked masked.
    mask_p = _pad_to(_pad_to(mask.astype(jnp.int8), 2, lk_p, value=1),
                     1, lq_p, value=1)

    wq_p = _pad_to(_pad_to(wq_t, 0, dq_p), 1, dq_p).astype(cdt)
    wk_p = _pad_to(_pad_to(wk_t, 0, dq_p), 1, dq_p).astype(cdt)
    wv_p = _pad_to(_pad_to(wv_t, 0, dv_p), 1, dv_p).astype(cdt)
    bq_p = _pad_to(bq.reshape(1, Dq).astype(jnp.float32), 1, dq_p)
    bv_p = _pad_to(bv.reshape(1, Dv).astype(jnp.float32), 1, dv_p)

    grid = (B // block_b, lq_p // block_q)
    kernel = functools.partial(_self_attention_kernel, approx_recip=approx)

    grid_spec = pltpu.PrefetchScalarGridSpec(
        num_scalar_prefetch=0,
        grid=grid,
        in_specs=[
            pl.BlockSpec((block_b, block_q, dq_p), lambda b, q: (b, q, 0)),  # query
            # K/V: constant block index over q -> fetched once per batch-block.
            pl.BlockSpec((block_b, lk_p, dq_p), lambda b, q: (b, 0, 0)),     # key
            pl.BlockSpec((block_b, lk_p, dv_p), lambda b, q: (b, 0, 0)),     # value
            pl.BlockSpec((block_b, block_q, lk_p), lambda b, q: (b, q, 0)),  # mask i8
            # Weights/biases: constant block index -> resident in VMEM.
            # TODO(synk): single-buffer these (pl.Buffered(1)) on v7x to save VMEM.
            pl.BlockSpec((dq_p, dq_p), lambda b, q: (0, 0)),                 # Wq^T/sqrt(D)
            pl.BlockSpec((1, dq_p), lambda b, q: (0, 0)),                    # bq/sqrt(D)
            pl.BlockSpec((dq_p, dq_p), lambda b, q: (0, 0)),                 # Wk^T
            pl.BlockSpec((dv_p, dv_p), lambda b, q: (0, 0)),                 # Wv^T
            pl.BlockSpec((1, dv_p), lambda b, q: (0, 0)),                    # bv
        ],
        out_specs=[
            pl.BlockSpec((block_b, block_q, lk_p), lambda b, q: (b, q, 0)),  # attn
            pl.BlockSpec((block_b, block_q, dv_p), lambda b, q: (b, q, 0)),  # output
        ],
        scratch_shapes=[
            pltpu.VMEM((block_b, lk_p, dq_p), cdt),   # projected K cache
            pltpu.VMEM((block_b, lk_p, dv_p), cdt),   # projected V cache
        ],
    )

    flops = int(2 * B * (lq_p * dq_p * dq_p          # q projection
                         + lk_p * dq_p * dq_p        # k projection
                         + lk_p * dv_p * dv_p        # v projection
                         + lq_p * lk_p * dq_p        # logits
                         + lq_p * lk_p * dv_p))      # attn @ V
    transcendentals = int(B * lq_p * lk_p)           # exp
    bytes_accessed = int(
        (q_p.size + k_p.size + v_p.size) * cbytes + mask_p.size
        + (wq_p.size + wk_p.size + wv_p.size) * cbytes
        + (bq_p.size + bv_p.size) * 4
        + B * lq_p * lk_p * out_bytes + B * lq_p * dv_p * out_bytes)

    vmem_limit = int(min(vmem_cap - (8 << 20),
                         max(2 * _vmem_estimate(block_b, block_q, lk_p, dq_p,
                                                dv_p, cbytes, out_bytes),
                             32 << 20)))

    attn_p, out_p = pl.pallas_call(
        kernel,
        grid_spec=grid_spec,
        out_shape=(
            jax.ShapeDtypeStruct((B, lq_p, lk_p), out_dtype),
            jax.ShapeDtypeStruct((B, lq_p, dv_p), out_dtype),
        ),
        compiler_params=pltpu.CompilerParams(
            # q axis must be 'arbitrary': the K/V scratch carries across it.
            dimension_semantics=("parallel", "arbitrary"),
            vmem_limit_bytes=vmem_limit,
        ),
        cost_estimate=pl.CostEstimate(
            flops=flops, transcendentals=transcendentals,
            bytes_accessed=bytes_accessed),
    )(q_p, k_p, v_p, mask_p, wq_p, bq_p, wk_p, wv_p, bv_p)

    # Slice away padding only if any was applied (aligned shapes = fast path).
    attn_out = attn_p if (lq_p == Lq and lk_p == Lk) else attn_p[:, :Lq, :Lk]
    out_out = out_p if (lq_p == Lq and dv_p == Dv) else out_p[:, :Lq, :Dv]
    return attn_out, out_out


def _reference(query, key, value, mask, params):
    q = query @ params["q_W.weight"].T + params["q_W.bias"]
    k = key @ params["k_W.weight"].T
    v = value @ params["v_W.weight"].T + params["v_W.bias"]
    scale = math.sqrt(float(q.shape[-1]))
    logits = jnp.einsum("bqd,bkd->bqk", q, k) / scale
    logits = jnp.where(mask, -jnp.inf, logits)
    attn = jax.nn.softmax(logits, axis=-1)
    out = jnp.einsum("bqk,bkd->bqd", attn, v)
    return attn, out


if __name__ == "__main__":
    key_rng = jax.random.PRNGKey(0)
    ks = jax.random.split(key_rng, 10)

    B, Lq, Lk = 2, 16, 16
    Dq = Dk = Dv = 32

    params = {
        "q_W.weight": jax.random.normal(ks[0], (Dq, Dq), jnp.float32) * 0.1,
        "q_W.bias":   jax.random.normal(ks[1], (Dq,), jnp.float32) * 0.1,
        "k_W.weight": jax.random.normal(ks[2], (Dk, Dk), jnp.float32) * 0.1,
        "v_W.weight": jax.random.normal(ks[3], (Dv, Dv), jnp.float32) * 0.1,
        "v_W.bias":   jax.random.normal(ks[4], (Dv,), jnp.float32) * 0.1,
    }

    query = jax.random.normal(ks[5], (B, Lq, Dq), jnp.float32)
    key_t = jax.random.normal(ks[6], (B, Lk, Dk), jnp.float32)
    value = jax.random.normal(ks[7], (B, Lk, Dv), jnp.float32)
    # Random boolean mask, but keep at least one unmasked key per query row.
    mask = jax.random.bernoulli(ks[8], p=0.3, shape=(B, Lq, Lk))
    mask = mask.at[:, :, 0].set(False)

    attn_ref, out_ref = _reference(query, key_t, value, mask, params)

    # Strict f32 path, auto tiling (single q-tile per batch-block).
    attn32, out32 = self_attention(query, key_t, value, mask, params,
                                   compute_dtype=jnp.float32)
    jax.block_until_ready((attn32, out32))
    assert jnp.allclose(attn32, attn_ref, atol=2e-5, rtol=2e-5), "attn mismatch (f32)"
    assert jnp.allclose(out32, out_ref, atol=2e-5, rtol=2e-5), "output mismatch (f32)"

    # Strict f32 path with a forced multi-q-tile grid: exercises the VMEM
    # scratch K/V cache across the 'arbitrary' q grid axis.
    attn32b, out32b = self_attention(query, key_t, value, mask, params,
                                     compute_dtype=jnp.float32,
                                     block_b=1, block_q=8)
    jax.block_until_ready((attn32b, out32b))
    assert jnp.allclose(attn32b, attn_ref, atol=2e-5, rtol=2e-5), "attn mismatch (tiled f32)"
    assert jnp.allclose(out32b, out_ref, atol=2e-5, rtol=2e-5), "output mismatch (tiled f32)"

    # Default fast path: bf16 matmul operands + bf16 attn/out writeback,
    # f32 MXU accumulation, f32 softmax, approx reciprocal.
    attn16, out16 = self_attention(query, key_t, value, mask, params)
    jax.block_until_ready((attn16, out16))
    assert jnp.allclose(attn16.astype(jnp.float32), attn_ref,
                        atol=5e-2, rtol=5e-2), "attn mismatch (bf16)"
    assert jnp.allclose(out16.astype(jnp.float32), out_ref,
                        atol=1e-1, rtol=5e-2), "output mismatch (bf16)"

    print("KERNEL_OK")
</pallas_src>

<mosaic_0001>
module attributes {stable_mosaic.version = 11 : i64} {
  func.func @_self_attention_kernel(%arg0: i32, %arg1: i32, %arg2: memref<2x16x128xf32, #tpu.memory_space<vmem>>, %arg3: memref<2x128x128xf32, #tpu.memory_space<vmem>>, %arg4: memref<2x128x128xf32, #tpu.memory_space<vmem>>, %arg5: memref<2x16x128xi8, #tpu.memory_space<vmem>>, %arg6: memref<128x128xf32, #tpu.memory_space<vmem>>, %arg7: memref<1x128xf32, #tpu.memory_space<vmem>>, %arg8: memref<128x128xf32, #tpu.memory_space<vmem>>, %arg9: memref<128x128xf32, #tpu.memory_space<vmem>>, %arg10: memref<1x128xf32, #tpu.memory_space<vmem>>, %arg11: memref<2x16x128xf32, #tpu.memory_space<vmem>>, %arg12: memref<2x16x128xf32, #tpu.memory_space<vmem>>, %arg13: memref<2x128x128xf32, #tpu.memory_space<vmem>>, %arg14: memref<2x128x128xf32, #tpu.memory_space<vmem>>) attributes {dimension_semantics = [#tpu.dimension_semantics<parallel>, #tpu.dimension_semantics<arbitrary>], iteration_bounds = array<i64: 1, 1>, scalar_prefetch = 0 : i64, scratch_operands = 2 : i64, tpu.core_type = #tpu.core_type<tc>, window_params = [{transform_indices = @transform_0, window_bounds = array<i64: 2, 16, 128>}, {transform_indices = @transform_1, window_bounds = array<i64: 2, 128, 128>}, {transform_indices = @transform_2, window_bounds = array<i64: 2, 128, 128>}, {transform_indices = @transform_3, window_bounds = array<i64: 2, 16, 128>}, {pipeline_mode = #tpu.pipeline_mode<synchronous>, transform_indices = @transform_4, window_bounds = array<i64: 128, 128>}, {pipeline_mode = #tpu.pipeline_mode<synchronous>, transform_indices = @transform_5, window_bounds = array<i64: 1, 128>}, {pipeline_mode = #tpu.pipeline_mode<synchronous>, transform_indices = @transform_6, window_bounds = array<i64: 128, 128>}, {pipeline_mode = #tpu.pipeline_mode<synchronous>, transform_indices = @transform_7, window_bounds = array<i64: 128, 128>}, {pipeline_mode = #tpu.pipeline_mode<synchronous>, transform_indices = @transform_8, window_bounds = array<i64: 1, 128>}, {transform_indices = @transform_9, window_bounds = array<i64: 2, 16, 128>}, {transform_indices = @transform_10, window_bounds = array<i64: 2, 16, 128>}]} {
    %c0_i32 = arith.constant 0 : i32
    %0 = arith.cmpi eq, %arg1, %c0_i32 : i32
    %1 = arith.extui %0 : i1 to i32
    %c0_i32_0 = arith.constant 0 : i32
    %2 = arith.cmpi ne, %1, %c0_i32_0 : i32
    scf.if %2 {
      %c0_27 = arith.constant 0 : index
      %c0_28 = arith.constant 0 : index
      %c0_29 = arith.constant 0 : index
      %31 = vector.load %arg3[%c0_27, %c0_28, %c0_29] : memref<2x128x128xf32, #tpu.memory_space<vmem>>, vector<2x128x128xf32>
      %32 = vector.shape_cast %31 : vector<2x128x128xf32> to vector<256x128xf32>
      %c0_30 = arith.constant 0 : index
      %c0_31 = arith.constant 0 : index
      %33 = vector.load %arg8[%c0_30, %c0_31] : memref<128x128xf32, #tpu.memory_space<vmem>>, vector<128x128xf32>
      %cst_32 = arith.constant dense<0.000000e+00> : vector<256x128xf32>
      %34 = tpu.matmul %32, %33, %cst_32 {dimension_numbers = #tpu.dot_dimension_numbers<[1], [0], [0], [1], [0, 0, 1, 1], [], []>} : vector<256x128xf32>, vector<128x128xf32>, vector<256x128xf32> -> vector<256x128xf32>
      %c0_33 = arith.constant 0 : index
      %c0_34 = arith.constant 0 : index
      %c0_35 = arith.constant 0 : index
      %35 = vector.load %arg4[%c0_33, %c0_34, %c0_35] : memref<2x128x128xf32, #tpu.memory_space<vmem>>, vector<2x128x128xf32>
      %36 = vector.shape_cast %35 : vector<2x128x128xf32> to vector<256x128xf32>
      %c0_36 = arith.constant 0 : index
      %c0_37 = arith.constant 0 : index
      %37 = vector.load %arg9[%c0_36, %c0_37] : memref<128x128xf32, #tpu.memory_space<vmem>>, vector<128x128xf32>
      %cst_38 = arith.constant dense<0.000000e+00> : vector<256x128xf32>
      %38 = tpu.matmul %36, %37, %cst_38 {dimension_numbers = #tpu.dot_dimension_numbers<[1], [0], [0], [1], [0, 0, 1, 1], [], []>} : vector<256x128xf32>, vector<128x128xf32>, vector<256x128xf32> -> vector<256x128xf32>
      %c0_39 = arith.constant 0 : index
      %c0_40 = arith.constant 0 : index
      %39 = vector.load %arg10[%c0_39, %c0_40] : memref<1x128xf32, #tpu.memory_space<vmem>>, vector<1x128xf32>
      %40 = vector.broadcast %39 : vector<1x128xf32> to vector<256x128xf32>
      %41 = arith.addf %38, %40 : vector<256x128xf32>
      %42 = vector.shape_cast %34 : vector<256x128xf32> to vector<2x128x128xf32>
      %c0_41 = arith.constant 0 : index
      %c0_42 = arith.constant 0 : index
      %c0_43 = arith.constant 0 : index
      %43 = vector.load %arg13[%c0_41, %c0_42, %c0_43] : memref<2x128x128xf32, #tpu.memory_space<vmem>>, vector<2x128x128xf32>
      tpu.vector_store %arg13[%c0_41, %c0_42, %c0_43], %42 {strides = array<i32>} : memref<2x128x128xf32, #tpu.memory_space<vmem>>, vector<2x128x128xf32>,
      %44 = vector.shape_cast %41 : vector<256x128xf32> to vector<2x128x128xf32>
      %c0_44 = arith.constant 0 : index
      %c0_45 = arith.constant 0 : index
      %c0_46 = arith.constant 0 : index
      %45 = vector.load %arg14[%c0_44, %c0_45, %c0_46] : memref<2x128x128xf32, #tpu.memory_space<vmem>>, vector<2x128x128xf32>
      tpu.vector_store %arg14[%c0_44, %c0_45, %c0_46], %44 {strides = array<i32>} : memref<2x128x128xf32, #tpu.memory_space<vmem>>, vector<2x128x128xf32>,
    } else {
    }
    %c0 = arith.constant 0 : index
    %c0_1 = arith.constant 0 : index
    %c0_2 = arith.constant 0 : index
    %3 = vector.load %arg2[%c0, %c0_1, %c0_2] : memref<2x16x128xf32, #tpu.memory_space<vmem>>, vector<2x16x128xf32>
    %4 = vector.shape_cast %3 : vector<2x16x128xf32> to vector<32x128xf32>
    %c0_3 = arith.constant 0 : index
    %c0_4 = arith.constant 0 : index
    %5 = vector.load %arg6[%c0_3, %c0_4] : memref<128x128xf32, #tpu.memory_space<vmem>>, vector<128x128xf32>
    %cst = arith.constant dense<0.000000e+00> : vector<32x128xf32>
    %6 = tpu.matmul %4, %5, %cst {dimension_numbers = #tpu.dot_dimension_numbers<[1], [0], [0], [1], [0, 0, 1, 1], [], []>} : vector<32x128xf32>, vector<128x128xf32>, vector<32x128xf32> -> vector<32x128xf32>
    %c0_5 = arith.constant 0 : index
    %c0_6 = arith.constant 0 : index
    %7 = vector.load %arg7[%c0_5, %c0_6] : memref<1x128xf32, #tpu.memory_space<vmem>>, vector<1x128xf32>
    %8 = vector.broadcast %7 : vector<1x128xf32> to vector<32x128xf32>
    %9 = arith.addf %6, %8 : vector<32x128xf32>
    %10 = vector.shape_cast %9 : vector<32x128xf32> to vector<2x16x128xf32>
    %c0_7 = arith.constant 0 : index
    %c0_8 = arith.constant 0 : index
    %c0_9 = arith.constant 0 : index
    %11 = vector.load %arg13[%c0_7, %c0_8, %c0_9] : memref<2x128x128xf32, #tpu.memory_space<vmem>>, vector<2x128x128xf32>
    "tpu.trace_start"() <{level = 10 : i32, message = "bqd,bkd->bqk"}> : () -> ()
    %cst_10 = arith.constant dense<0.000000e+00> : vector<2x16x128xf32>
    %12 = tpu.matmul %10, %11, %cst_10 {dimension_numbers = #tpu.dot_dimension_numbers<[2], [2], [1], [1], [0, 0, 0, 1, 1, 1], [0], [0]>} : vector<2x16x128xf32>, vector<2x128x128xf32>, vector<2x16x128xf32> -> vector<2x16x128xf32>
    "tpu.trace_stop"() : () -> ()
    %c0_11 = arith.constant 0 : index
    %c0_12 = arith.constant 0 : index
    %c0_13 = arith.constant 0 : index
    %13 = vector.load %arg5[%c0_11, %c0_12, %c0_13] : memref<2x16x128xi8, #tpu.memory_space<vmem>>, vector<2x16x128xi8>
    %c0_i8 = arith.constant 0 : i8
    %14 = vector.broadcast %c0_i8 : i8 to vector<2x16x128xi8>
    %15 = arith.cmpi ne, %13, %14 : vector<2x16x128xi8>
    %cst_14 = arith.constant -1.000000e+30 : f32
    %16 = vector.broadcast %cst_14 : f32 to vector<2x16x128xf32>
    %17 = arith.select %15, %16, %12 : vector<2x16x128xi1>, vector<2x16x128xf32>
    %cst_15 = arith.constant dense<0xFF800000> : vector<2x16xf32>
    %18 = vector.multi_reduction <maximumf>, %17, %cst_15 [2] : vector<2x16x128xf32> to vector<2x16xf32>
    %19 = vector.shape_cast %18 : vector<2x16xf32> to vector<2x16x1xf32>
    %20 = vector.broadcast %19 : vector<2x16x1xf32> to vector<2x16x128xf32>
    %21 = arith.subf %17, %20 : vector<2x16x128xf32>
    %22 = math.exp %21 : vector<2x16x128xf32>
    %cst_16 = arith.constant dense<0.000000e+00> : vector<2x16xf32>
    %23 = vector.multi_reduction <add>, %22, %cst_16 [2] : vector<2x16x128xf32> to vector<2x16xf32>
    %24 = vector.shape_cast %23 : vector<2x16xf32> to vector<2x16x1xf32>
    %25 = vector.broadcast %24 : vector<2x16x1xf32> to vector<2x16x128xf32>
    %26 = arith.divf %22, %25 : vector<2x16x128xf32>
    %c0_17 = arith.constant 0 : index
    %c0_18 = arith.constant 0 : index
    %c0_19 = arith.constant 0 : index
    %27 = vector.load %arg14[%c0_17, %c0_18, %c0_19] : memref<2x128x128xf32, #tpu.memory_space<vmem>>, vector<2x128x128xf32>
    "tpu.trace_start"() <{level = 10 : i32, message = "bqk,bkd->bqd"}> : () -> ()
    %cst_20 = arith.constant dense<0.000000e+00> : vector<2x16x128xf32>
    %28 = tpu.matmul %26, %27, %cst_20 {dimension_numbers = #tpu.dot_dimension_numbers<[2], [1], [1], [2], [0, 0, 0, 1, 1, 2], [0], [0]>} : vector<2x16x128xf32>, vector<2x128x128xf32>, vector<2x16x128xf32> -> vector<2x16x128xf32>
    "tpu.trace_stop"() : () -> ()
    %c0_21 = arith.constant 0 : index
    %c0_22 = arith.constant 0 : index
    %c0_23 = arith.constant 0 : index
    %29 = vector.load %arg11[%c0_21, %c0_22, %c0_23] : memref<2x16x128xf32, #tpu.memory_space<vmem>>, vector<2x16x128xf32>
    tpu.vector_store %arg11[%c0_21, %c0_22, %c0_23], %26 {strides = array<i32>} : memref<2x16x128xf32, #tpu.memory_space<vmem>>, vector<2x16x128xf32>,
    %c0_24 = arith.constant 0 : index
    %c0_25 = arith.constant 0 : index
    %c0_26 = arith.constant 0 : index
    %30 = vector.load %arg12[%c0_24, %c0_25, %c0_26] : memref<2x16x128xf32, #tpu.memory_space<vmem>>, vector<2x16x128xf32>
    tpu.vector_store %arg12[%c0_24, %c0_25, %c0_26], %28 {strides = array<i32>} : memref<2x16x128xf32, #tpu.memory_space<vmem>>, vector<2x16x128xf32>,
    return
  }
  func.func @transform_0(%arg0: i32, %arg1: i32) -> (i32, i32, i32) {
    %c0_i32 = arith.constant 0 : i32
    %c0_i32_0 = arith.constant 0 : i32
    return %arg0, %arg1, %c0_i32 : i32, i32, i32
  }
  func.func @transform_1(%arg0: i32, %arg1: i32) -> (i32, i32, i32) {
    %c0_i32 = arith.constant 0 : i32
    %c0_i32_0 = arith.constant 0 : i32
    %c0_i32_1 = arith.constant 0 : i32
    return %arg0, %c0_i32, %c0_i32_0 : i32, i32, i32
  }
  func.func @transform_2(%arg0: i32, %arg1: i32) -> (i32, i32, i32) {
    %c0_i32 = arith.constant 0 : i32
    %c0_i32_0 = arith.constant 0 : i32
    %c0_i32_1 = arith.constant 0 : i32
    return %arg0, %c0_i32, %c0_i32_0 : i32, i32, i32
  }
  func.func @transform_3(%arg0: i32, %arg1: i32) -> (i32, i32, i32) {
    %c0_i32 = arith.constant 0 : i32
    %c0_i32_0 = arith.constant 0 : i32
    return %arg0, %arg1, %c0_i32 : i32, i32, i32
  }
  func.func @transform_4(%arg0: i32, %arg1: i32) -> (i32, i32) {
    %c0_i32 = arith.constant 0 : i32
    %c0_i32_0 = arith.constant 0 : i32
    %c0_i32_1 = arith.constant 0 : i32
    return %c0_i32, %c0_i32_0 : i32, i32
  }
  func.func @transform_5(%arg0: i32, %arg1: i32) -> (i32, i32) {
    %c0_i32 = arith.constant 0 : i32
    %c0_i32_0 = arith.constant 0 : i32
    %c0_i32_1 = arith.constant 0 : i32
    return %c0_i32, %c0_i32_0 : i32, i32
  }
  func.func @transform_6(%arg0: i32, %arg1: i32) -> (i32, i32) {
    %c0_i32 = arith.constant 0 : i32
    %c0_i32_0 = arith.constant 0 : i32
    %c0_i32_1 = arith.constant 0 : i32
    return %c0_i32, %c0_i32_0 : i32, i32
  }
  func.func @transform_7(%arg0: i32, %arg1: i32) -> (i32, i32) {
    %c0_i32 = arith.constant 0 : i32
    %c0_i32_0 = arith.constant 0 : i32
    %c0_i32_1 = arith.constant 0 : i32
    return %c0_i32, %c0_i32_0 : i32, i32
  }
  func.func @transform_8(%arg0: i32, %arg1: i32) -> (i32, i32) {
    %c0_i32 = arith.constant 0 : i32
    %c0_i32_0 = arith.constant 0 : i32
    %c0_i32_1 = arith.constant 0 : i32
    return %c0_i32, %c0_i32_0 : i32, i32
  }
  func.func @transform_9(%arg0: i32, %arg1: i32) -> (i32, i32, i32) {
    %c0_i32 = arith.constant 0 : i32
    %c0_i32_0 = arith.constant 0 : i32
    return %arg0, %arg1, %c0_i32 : i32, i32, i32
  }
  func.func @transform_10(%arg0: i32, %arg1: i32) -> (i32, i32, i32) {
    %c0_i32 = arith.constant 0 : i32
    %c0_i32_0 = arith.constant 0 : i32
    return %arg0, %arg1, %c0_i32 : i32, i32, i32
  }
}

</mosaic_0001>

<bundles_post_ra>
// kernel: tpu_custom_call.1
= control target key start
LH: loop header
LB: loop body
LE: loop exit
PB: predicated region body
PF: predicated region fallthrough
CT: control target
= control target key end

     0   :  { %16 = vsyncpa [#allocation5], 0  ;;  %s2393_s0 = inlined_call_operand.hbm [shape: f32[2,16,128], index: 0, kind: input, shape index: {}]   ;;  %s2394_s1 = inlined_call_operand.hbm [shape: f32[2,128,128], index: 1, kind: input, shape index: {}]   ;;  %s2395_s2 = inlined_call_operand.hbm [shape: f32[2,128,128], index: 2, kind: input, shape index: {}]   ;;  %s2396_s3 = inlined_call_operand.hbm [shape: s8[2,16,128], index: 3, kind: input, shape index: {}]   ;;  %s2397_s4 = inlined_call_operand.hbm [shape: f32[128,128], index: 4, kind: input, shape index: {}]   ;;  %s2398_s5 = inlined_call_operand.vmem [shape: f32[1,128], index: 5, kind: input, shape index: {}]   ;;  %s2399_s6 = inlined_call_operand.hbm [shape: f32[128,128], index: 6, kind: input, shape index: {}]   ;;  %s2400_s7 = inlined_call_operand.hbm [shape: f32[128,128], index: 7, kind: input, shape index: {}]   ;;  %s2401_s8 = inlined_call_operand.vmem [shape: f32[1,128], index: 8, kind: input, shape index: {}]   ;;  %s2402_s9 = inlined_call_operand.hbm [shape: f32[2,16,128], index: 9, kind: output, shape index: {0}]   ;;  %s2403_s10 = inlined_call_operand.hbm [shape: f32[2,16,128], index: 10, kind: output, shape index: {1}]  }
   0x1   :  { %17 = vsyncpa [#allocation8], 0 }
   0x2   :  { %18 = vsyncpa [#allocation11], 0 }
   0x3   :  { %19 = vsyncpa [#allocation14], 0 }
   0x4   :  { %20 = vsyncpa [#allocation6], 0 }
   0x5   :  { %21 = vsyncpa [#allocation18], 0  ;;  %s2084_s13 = smov [#allocation7]   ;;  %s2085_s15 = smov [#allocation10]  }
   0x6   :  { %s39_s14 = sshll.u32 %s2084_s13, 4  ;;  %s63_s16 = sshll.u32 %s2085_s15, 4  ;;  %s40_s14 = int_to_ptr.vmem [resolvable:$true] %s39_s14  ;;  %s64_s16 = int_to_ptr.vmem [resolvable:$true] %s63_s16 }
   0x7   :  { %s1900_s17 = scalar_lea.vmem %s40_s14, 4096  ;;  %p1905_p1 = scmp.lt.s32.totalorder %s40_s14, %s40_s14 }
   0x8   :  { %p1901_p0 = scmp.ne.s32.totalorder %s40_s14, %s1900_s17  ;;  %p1906_p2 = scmp.lt.s32.totalorder %s1900_s17, %s1900_s17 }
   0xa   :  { %p1907_p3 = por %p1906_p2, %p1905_p1 }
   0xc   :  { %p1908_p4 = pnand %p1907_p3, %p1901_p0 }
   0xe   :  { %1911 = shalt.err (!%p1908_p4)
}
   0xf   :  { %s2086_s18 = smov 128   ;;  %s2087_s19 = smov 8  }
  0x10   :  { %45 = dma.hbm_to_vmem [thread:$0]  %s2394_s1, 4096, %s40_s14, [#allocation8], %s2086_s18, %s2086_s18, %s2087_s19  }
  0x11   :  { %s1920_s22 = scalar_lea.vmem %s64_s16, 128  ;;  %p1925_p6 = scmp.lt.s32.totalorder %s64_s16, %s64_s16 }
  0x12   :  { %p1921_p5 = scmp.ne.s32.totalorder %s64_s16, %s1920_s22  ;;  %p1926_p7 = scmp.lt.s32.totalorder %s1920_s22, %s1920_s22 }
  0x14   :  { %p1927_p8 = por %p1926_p7, %p1925_p6 }
  0x16   :  { %p1928_p9 = pnand %p1927_p8, %p1921_p5 }
  0x18   :  { %1931 = shalt.err (!%p1928_p9)
}
  0x19   :  { %s2088_s23 = smov 32   ;;  %s2089_s24 = smov 2  }
  0x1a   :  { %69 = dma.hbm_to_vmem [thread:$0]  %s2396_s3, 128, %s64_s16, [#allocation11], %s2088_s23, %s2088_s23, %s2089_s24  }
  0x1b   :  { %s2090_s27 = smov [#allocation13]   ;;  %s2091_s29 = smov [#allocation4]  }
  0x1c   :  { %s89_s28 = sshll.u32 %s2090_s27, 4  ;;  %s27_s30 = sshll.u32 %s2091_s29, 4  ;;  %s90_s28 = int_to_ptr.vmem [resolvable:$true] %s89_s28  ;;  %s28_s30 = int_to_ptr.vmem [resolvable:$true] %s27_s30 }
  0x1d   :  { %s1940_s1 = scalar_lea.vmem %s90_s28, 2048  ;;  %p1945_p11 = scmp.lt.s32.totalorder %s90_s28, %s90_s28 }
  0x1e   :  { %p1941_p10 = scmp.ne.s32.totalorder %s90_s28, %s1940_s1  ;;  %p1946_p12 = scmp.lt.s32.totalorder %s1940_s1, %s1940_s1 }
  0x20   :  { %p1947_p13 = por %p1946_p12, %p1945_p11 }
  0x22   :  { %p1948_p0 = pnand %p1947_p13, %p1941_p10 }
  0x24   :  { %1951 = shalt.err (!%p1948_p0)
}
  0x25   :  { %95 = dma.hbm_to_vmem [thread:$0]  %s2399_s6, 2048, %s90_s28, [#allocation14], %s2086_s18, %s2086_s18, %s2087_s19  }
  0x26   :  { %s1960_s3 = scalar_lea.vmem %s28_s30, 512  ;;  %p1965_p2 = scmp.lt.s32.totalorder %s28_s30, %s28_s30 }
  0x27   :  { %p1961_p1 = scmp.ne.s32.totalorder %s28_s30, %s1960_s3  ;;  %p1966_p3 = scmp.lt.s32.totalorder %s1960_s3, %s1960_s3 }
  0x29   :  { %p1967_p4 = por %p1966_p3, %p1965_p2 }
  0x2b   :  { %p1968_p5 = pnand %p1967_p4, %p1961_p1 }
  0x2d   :  { %1971 = shalt.err (!%p1968_p5)
}
  0x2e   :  { %33 = dma.hbm_to_vmem [thread:$0]  %s2393_s0, 512, %s28_s30, [#allocation5], %s2086_s18, %s2086_s18, %s2087_s19  }
  0x2f   :  { %s2092_s15 = smov [#allocation9]   ;;  %s2093_s17 = smov [#allocation12]  }
  0x30   :  { %s51_s16 = sshll.u32 %s2092_s15, 4  ;;  %s75_s20 = sshll.u32 %s2093_s17, 4  ;;  %s52_s16 = int_to_ptr.vmem [resolvable:$true] %s51_s16  ;;  %s76_s20 = int_to_ptr.vmem [resolvable:$true] %s75_s20 }
  0x31   :  { %s1980_s6 = scalar_lea.vmem %s52_s16, 4096  ;;  %p1985_p7 = scmp.lt.s32.totalorder %s52_s16, %s52_s16 }
  0x32   :  { %p1981_p6 = scmp.ne.s32.totalorder %s52_s16, %s1980_s6  ;;  %p1986_p8 = scmp.lt.s32.totalorder %s1980_s6, %s1980_s6 }
  0x34   :  { %p1987_p9 = por %p1986_p8, %p1985_p7 }
  0x36   :  { %p1988_p10 = pnand %p1987_p9, %p1981_p6 }
  0x38   :  { %1991 = shalt.err (!%p1988_p10)
}
  0x39   :  { %57 = dma.hbm_to_vmem [thread:$0]  %s2395_s2, 4096, %s52_s16, [#allocation8], %s2086_s18, %s2086_s18, %s2087_s19  }
  0x3a   :  { %s2000_s0 = scalar_lea.vmem %s76_s20, 2048  ;;  %p2005_p12 = scmp.lt.s32.totalorder %s76_s20, %s76_s20 }
  0x3b   :  { %p2001_p11 = scmp.ne.s32.totalorder %s76_s20, %s2000_s0  ;;  %p2006_p13 = scmp.lt.s32.totalorder %s2000_s0, %s2000_s0 }
  0x3d   :  { %p2007_p0 = por %p2006_p13, %p2005_p12 }
  0x3f   :  { %p2008_p1 = pnand %p2007_p0, %p2001_p11 }
  0x41   :  { %2011 = shalt.err (!%p2008_p1)
}
  0x42   :  { %81 = dma.hbm_to_vmem [thread:$0]  %s2397_s4, 2048, %s76_s20, [#allocation11], %s2086_s18, %s2086_s18, %s2087_s19  }
  0x43   :  { %s2094_s25 = smov [#allocation15]  }
  0x44   :  { %s101_s26 = sshll.u32 %s2094_s25, 4  ;;  %s102_s26 = int_to_ptr.vmem [resolvable:$true] %s101_s26 }
  0x45   :  { %s2020_s27 = scalar_lea.vmem %s102_s26, 2048  ;;  %p2025_p3 = scmp.lt.s32.totalorder %s102_s26, %s102_s26 }
  0x46   :  { %p2021_p2 = scmp.ne.s32.totalorder %s102_s26, %s2020_s27  ;;  %p2026_p4 = scmp.lt.s32.totalorder %s2020_s27, %s2020_s27 }
  0x48   :  { %p2027_p5 = por %p2026_p4, %p2025_p3 }
  0x4a   :  { %p2028_p6 = pnand %p2027_p5, %p2021_p2 }
  0x4c   :  { %2031 = shalt.err (!%p2028_p6)
}
  0x4d   :  { %107 = dma.hbm_to_vmem [thread:$0]  %s2400_s7, 2048, %s102_s26, [#allocation14], %s2086_s18, %s2086_s18, %s2087_s19  }
  0x4e   :  { %2072 = dma.done.wait [#allocation5], 512  }
  0x4f   :  { %2073 = vsyncadd [#allocation5], 4294966784 }
  0x50   :  { %2074 = dma.done.wait [#allocation8], 8192  }
  0x51   :  { %2075 = vsyncadd [#allocation8], 4294959104 }
  0x52   :  { %2076 = dma.done.wait [#allocation11], 2176  }
  0x53   :  { %2077 = vsyncadd [#allocation11], 4294965120 }
  0x54   :  { %2078 = dma.done.wait [#allocation14], 4096  }
  0x55   :  { %2079 = vsyncadd [#allocation14], 4294963200  ;;  %v184_v0 = vld [vmem:[#allocation13 + $0x78] sm:$0xff]  ;;  %v183_v1 = vld [vmem:[#allocation13 + $0x70] sm:$0xff] }
  0x56   :  { %1524 = vmatprep.subr.mxu0 %v184_v0  ;;  %v182_v2 = vld [vmem:[#allocation13 + $0x68] sm:$0xff]  ;;  %v181_v3 = vld [vmem:[#allocation13 + $0x60] sm:$0xff]  ;;  %v137_v4 = vld [vmem:[#allocation7] sm:$0xff] }
  0x57   :  { %1525 = vmatpush3.msra.mxu0 %v184_v0  ;;  %v180_v5 = vld [vmem:[#allocation13 + $0x58] sm:$0xff]  ;;  %1556 = vmatprep.mubr.f32.mxu0 %v137_v4  ;;  %v179_v6 = vld [vmem:[#allocation13 + $0x50] sm:$0xff]  ;;  %v178_v7 = vld [vmem:[#allocation13 + $0x48] sm:$0xff] }
  0x58   :  { %1526 = vmatprep.subr.mxu0 %v183_v1  ;;  %v177_v8 = vld [vmem:[#allocation13 + $0x40] sm:$0xff]  ;;  %v176_v9 = vld [vmem:[#allocation13 + $0x38] sm:$0xff]  ;;  %v175_v10 = vld [vmem:[#allocation13 + $0x30] sm:$0xff] }
  0x59   :  { %1527 = vmatpush3.msra.mxu0 %v183_v1  ;;  %v174_v11 = vld [vmem:[#allocation13 + $0x28] sm:$0xff]  ;;  %v173_v12 = vld [vmem:[#allocation13 + $0x20] sm:$0xff]  ;;  %v172_v13 = vld [vmem:[#allocation13 + $0x18] sm:$0xff] }
  0x5a   :  { %1528 = vmatprep.subr.mxu0 %v182_v2  ;;  %v457_v14 = vld [vmem:[#allocation15 + $0x78] sm:$0xff]  ;;  %v456_v15 = vld [vmem:[#allocation15 + $0x70] sm:$0xff]  ;;  %v455_v17 = vld [vmem:[#allocation15 + $0x68] sm:$0xff] }
  0x5b   :  { %1529 = vmatpush3.msra.mxu0 %v182_v2  ;;  %1604 = vmatprep.subr.mxu1 %v457_v14  ;;  %v171_v16 = vld [vmem:[#allocation13 + $0x10] sm:$0xff]  ;;  %v170_v18 = vld [vmem:[#allocation13 + $0x8] sm:$0xff]  ;;  %v454_v19 = vld [vmem:[#allocation15 + $0x60] sm:$0xff] }
  0x5c   :  { %1530 = vmatprep.subr.mxu0 %v181_v3  ;;  %1605 = vmatpush3.msra.mxu1 %v457_v14  ;;  %v169_v20 = vld [vmem:[#allocation13] sm:$0xff]  ;;  %v453_v21 = vld [vmem:[#allocation15 + $0x58] sm:$0xff]  ;;  %v139_v24 = vld [vmem:[#allocation7 + $0x10] sm:$0xff] }
  0x5d   :  { %1531 = vmatpush3.msra.mxu0 %v181_v3  ;;  %1606 = vmatprep.subr.mxu1 %v456_v15  ;;  %v138_v22 = vld [vmem:[#allocation7 + $0x8] sm:$0xff]  ;;  %v773_v23 = vld [vmem:[#allocation12 + $0x78] sm:$0xff]  ;;  %v772_v25 = vld [vmem:[#allocation12 + $0x70] sm:$0xff] }
  0x5e   :  { %1532 = vmatprep.subr.mxu0 %v180_v5  ;;  %1607 = vmatpush3.msra.mxu1 %v456_v15  ;;  %v452_v26 = vld [vmem:[#allocation15 + $0x50] sm:$0xff]  ;;  %v771_v28 = vld [vmem:[#allocation12 + $0x68] sm:$0xff]  ;;  %v141_v29 = vld [vmem:[#allocation7 + $0x20] sm:$0xff] }
  0x5f   :  { %1533 = vmatpush3.msra.mxu0 %v180_v5  ;;  %1608 = vmatprep.subr.mxu1 %v455_v17  ;;  %v140_v27 = vld [vmem:[#allocation7 + $0x18] sm:$0xff]  ;;  %v770_v30 = vld [vmem:[#allocation12 + $0x60] sm:$0xff]  ;;  %v451_v31 = vld [vmem:[#allocation15 + $0x48] sm:$0xff] }
  0x60   :  { %1534 = vmatprep.subr.mxu0 %v179_v6  ;;  %1609 = vmatpush3.msra.mxu1 %v455_v17  ;;  %v142_v32 = vld [vmem:[#allocation7 + $0x28] sm:$0xff]  ;;  %v769_v33 = vld [vmem:[#allocation12 + $0x58] sm:$0xff]  ;;  %v143_v34 = vld [vmem:[#allocation7 + $0x30] sm:$0xff] }
  0x61   :  { %1535 = vmatpush3.msra.mxu0 %v179_v6  ;;  %1610 = vmatprep.subr.mxu1 %v454_v19  ;;  %v768_v35 = vld [vmem:[#allocation12 + $0x50] sm:$0xff]  ;;  %v450_v36 = vld [vmem:[#allocation15 + $0x40] sm:$0xff]  ;;  %v767_v38 = vld [vmem:[#allocation12 + $0x48] sm:$0xff] }
  0x62   :  { %1536 = vmatprep.subr.mxu0 %v178_v7  ;;  %1611 = vmatpush3.msra.mxu1 %v454_v19  ;;  %v144_v37 = vld [vmem:[#allocation7 + $0x38] sm:$0xff]  ;;  %v145_v39 = vld [vmem:[#allocation7 + $0x40] sm:$0xff]  ;;  %v766_v40 = vld [vmem:[#allocation12 + $0x40] sm:$0xff] }
  0x63   :  { %1537 = vmatpush3.msra.mxu0 %v178_v7  ;;  %1612 = vmatprep.subr.mxu1 %v453_v21  ;;  %v449_v41 = vld [vmem:[#allocation15 + $0x38] sm:$0xff]  ;;  %v146_v42 = vld [vmem:[#allocation7 + $0x48] sm:$0xff]  ;;  %v147_v44 = vld [vmem:[#allocation7 + $0x50] sm:$0xff] }
  0x64   :  { %1538 = vmatprep.subr.mxu0 %v177_v8  ;;  %1613 = vmatpush3.msra.mxu1 %v453_v21  ;;  %v765_v43 = vld [vmem:[#allocation12 + $0x38] sm:$0xff]  ;;  %v764_v45 = vld [vmem:[#allocation12 + $0x30] sm:$0xff]  ;;  %v763_v48 = vld [vmem:[#allocation12 + $0x28] sm:$0xff] }
  0x65   :  { %1539 = vmatpush3.msra.mxu0 %v177_v8  ;;  %1614 = vmatprep.subr.mxu1 %v452_v26  ;;  %v448_v46 = vld [vmem:[#allocation15 + $0x30] sm:$0xff]  ;;  %v149_v49 = vld [vmem:[#allocation7 + $0x60] sm:$0xff]  ;;  %v762_v50 = vld [vmem:[#allocation12 + $0x20] sm:$0xff] }
  0x66   :  { %1540 = vmatprep.subr.mxu0 %v176_v9  ;;  %1615 = vmatpush3.msra.mxu1 %v452_v26  ;;  %v148_v47 = vld [vmem:[#allocation7 + $0x58] sm:$0xff]  ;;  %v447_v51 = vld [vmem:[#allocation15 + $0x28] sm:$0xff]  ;;  %v150_v52 = vld [vmem:[#allocation7 + $0x68] sm:$0xff] }
  0x67   :  { %1541 = vmatpush3.msra.mxu0 %v176_v9  ;;  %1616 = vmatprep.subr.mxu1 %v451_v31  ;;  %v761_v53 = vld [vmem:[#allocation12 + $0x18] sm:$0xff]  ;;  %v151_v54 = vld [vmem:[#allocation7 + $0x70] sm:$0xff]  ;;  %v760_v55 = vld [vmem:[#allocation12 + $0x10] sm:$0xff] }
  0x68   :  { %1542 = vmatprep.subr.mxu0 %v175_v10  ;;  %1617 = vmatpush3.msra.mxu1 %v451_v31  ;;  %v446_v56 = vld [vmem:[#allocation15 + $0x20] sm:$0xff]  ;;  %v152_v57 = vld [vmem:[#allocation7 + $0x78] sm:$0xff]  ;;  %v759_v58 = vld [vmem:[#allocation12 + $0x8] sm:$0xff] }
  0x69   :  { %1543 = vmatpush3.msra.mxu0 %v175_v10  ;;  %1618 = vmatprep.subr.mxu1 %v450_v36  ;;  %v153_v59 = vld [vmem:[#allocation7 + $0x80] sm:$0xff]  ;;  %v758_v60 = vld [vmem:[#allocation12] sm:$0xff]  ;;  %v444_v63 = vld [vmem:[#allocation15 + $0x10] sm:$0xff] }
  0x6a   :  { %1544 = vmatprep.subr.mxu0 %v174_v11  ;;  %1619 = vmatpush3.msra.mxu1 %v450_v36  ;;  %v445_v61 = vld [vmem:[#allocation15 + $0x18] sm:$0xff]  ;;  %v154_v62 = vld [vmem:[#allocation7 + $0x88] sm:$0xff]  ;;  %v155_v0 = vld [vmem:[#allocation7 + $0x90] sm:$0xff] }
  0x6b   :  { %1545 = vmatpush3.msra.mxu0 %v174_v11  ;;  %1620 = vmatprep.subr.mxu1 %v449_v41  ;;  %v443_v1 = vld [vmem:[#allocation15 + $0x8] sm:$0xff]  ;;  %v410_v2 = vld [vmem:[#allocation9] sm:$0xff]  ;;  %v156_v3 = vld [vmem:[#allocation7 + $0x98] sm:$0xff] }
  0x6c   :  { %1546 = vmatprep.subr.mxu0 %v173_v12  ;;  %1621 = vmatpush3.msra.mxu1 %v449_v41  ;;  %v442_v4 = vld [vmem:[#allocation15] sm:$0xff]  ;;  %v157_v5 = vld [vmem:[#allocation7 + $0xa0] sm:$0xff]  ;;  %v412_v7 = vld [vmem:[#allocation9 + $0x10] sm:$0xff] }
  0x6d   :  { %1547 = vmatpush3.msra.mxu0 %v173_v12  ;;  %1622 = vmatprep.subr.mxu1 %v448_v46  ;;  %v411_v6 = vld [vmem:[#allocation9 + $0x8] sm:$0xff]  ;;  %v159_v9 = vld [vmem:[#allocation7 + $0xb0] sm:$0xff]  ;;  %v413_v10 = vld [vmem:[#allocation9 + $0x18] sm:$0xff] }
  0x6e   :  { %1548 = vmatprep.subr.mxu0 %v172_v13  ;;  %1623 = vmatpush3.msra.mxu1 %v448_v46  ;;  %v158_v8 = vld [vmem:[#allocation7 + $0xa8] sm:$0xff]  ;;  %v414_v11 = vld [vmem:[#allocation9 + $0x20] sm:$0xff]  ;;  %v160_v12 = vld [vmem:[#allocation7 + $0xb8] sm:$0xff] }
  0x6f   :  { %1549 = vmatpush3.msra.mxu0 %v172_v13  ;;  %1624 = vmatprep.subr.mxu1 %v447_v51  ;;  %v161_v13 = vld [vmem:[#allocation7 + $0xc0] sm:$0xff]  ;;  %v415_v14 = vld [vmem:[#allocation9 + $0x28] sm:$0xff]  ;;  %v416_v15 = vld [vmem:[#allocation9 + $0x30] sm:$0xff] }
  0x70   :  { %1550 = vmatprep.subr.mxu0 %v171_v16  ;;  %1625 = vmatpush3.msra.mxu1 %v447_v51  ;;  %v163_v17 = vld [vmem:[#allocation7 + $0xd0] sm:$0xff]  ;;  %v418_v19 = vld [vmem:[#allocation9 + $0x40] sm:$0xff]  ;;  %v421_v26 = vld [vmem:[#allocation9 + $0x58] sm:$0xff] }
  0x71   :  { %1551 = vmatpush3.msra.mxu0 %v171_v16  ;;  %1626 = vmatprep.subr.mxu1 %v446_v56  ;;  %v162_v16 = vld [vmem:[#allocation7 + $0xc8] sm:$0xff]  ;;  %v165_v21 = vld [vmem:[#allocation7 + $0xe0] sm:$0xff]  ;;  %v424_v31 = vld [vmem:[#allocation9 + $0x70] sm:$0xff] }
  0x72   :  { %1552 = vmatprep.subr.mxu0 %v170_v18  ;;  %1627 = vmatpush3.msra.mxu1 %v446_v56  ;;  %v426_v36 = vld [vmem:[#allocation9 + $0x80] sm:$0xff]  ;;  %v431_v41 = vld [vmem:[#allocation9 + $0xa8] sm:$0xff]  ;;  %v436_v46 = vld [vmem:[#allocation9 + $0xd0] sm:$0xff] }
  0x73   :  { %1553 = vmatpush3.msra.mxu0 %v170_v18  ;;  %1628 = vmatprep.subr.mxu1 %v445_v61  ;;  %v417_v18 = vld [vmem:[#allocation9 + $0x38] sm:$0xff] }
  0x74   :  { %1554 = vmatprep.subr.mxu0 %v169_v20  ;;  %1629 = vmatpush3.msra.mxu1 %v445_v61  ;;  %v441_v51 = vld [vmem:[#allocation9 + $0xf8] sm:$0xff] }
  0x75   :  { %1555 = vmatpush3.msra.mxu0 %v169_v20  ;;  %1630 = vmatprep.subr.mxu1 %v444_v63  ;;  %v164_v20 = vld [vmem:[#allocation7 + $0xd8] sm:$0xff] }
  0x76   :  { %1557 = vmatmul.mubr.f32.vlgmr.msra.gmra.mxu0 %v138_v22  ;;  %1684 = vmatprep.subr.mxu0 %v773_v23  ;;  %v419_v22 = vld [vmem:[#allocation9 + $0x48] sm:$0xff] }
  0x77   :  { %1559 = vmatprep.mubr.f32.mxu0 %v139_v24  ;;  %1685 = vmatpush3.msra.mxu0 %v773_v23  ;;  %v420_v23 = vld [vmem:[#allocation9 + $0x50] sm:$0xff]  ;;  %v166_v24 = vld [vmem:[#allocation7 + $0xe8] sm:$0xff] }
  0x78   :  { %1686 = vmatprep.subr.mxu0 %v772_v25  ;;  %1631 = vmatpush3.msra.mxu1 %v444_v63 }
  0x79   :  { %1687 = vmatpush3.msra.mxu0 %v772_v25  ;;  %1632 = vmatprep.subr.mxu1 %v443_v1  ;;  %v167_v25 = vld [vmem:[#allocation7 + $0xf0] sm:$0xff] }
  0x7a   :  { %1560 = vmatmul.mubr.f32.gmra.mxu0 %v140_v27  ;;  %1688 = vmatprep.subr.mxu0 %v771_v28  ;;  %v422_v27 = vld [vmem:[#allocation9 + $0x60] sm:$0xff] }
  0x7b   :  { %1562 = vmatprep.mubr.f32.mxu0 %v141_v29  ;;  %1689 = vmatpush3.msra.mxu0 %v771_v28  ;;  %v168_v28 = vld [vmem:[#allocation7 + $0xf8] sm:$0xff]  ;;  %v754_v29 = vld [vmem:[#allocation4] sm:$0xff] }
  0x7c   :  { %1690 = vmatprep.subr.mxu0 %v770_v30  ;;  %1636 = vmatprep.mubr.f32.mxu1 %v410_v2 }
  0x7d   :  { %1691 = vmatpush3.msra.mxu0 %v770_v30  ;;  %1633 = vmatpush3.msra.mxu1 %v443_v1  ;;  %v423_v30 = vld [vmem:[#allocation9 + $0x68] sm:$0xff] }
  0x7e   :  { %1563 = vmatmul.mubr.f32.gmra.mxu0 %v142_v32  ;;  %1692 = vmatprep.subr.mxu0 %v769_v33  ;;  %v755_v32 = vld [vmem:[#allocation4 + $0x8] sm:$0xff] }
  0x7f   :  { %1565 = vmatprep.mubr.f32.mxu0 %v143_v34  ;;  %1693 = vmatpush3.msra.mxu0 %v769_v33  ;;  %v756_v33 = vld [vmem:[#allocation4 + $0x10] sm:$0xff]  ;;  %v425_v34 = vld [vmem:[#allocation9 + $0x78] sm:$0xff] }
  0x80   :  { %1694 = vmatprep.subr.mxu0 %v768_v35  ;;  %1634 = vmatprep.subr.mxu1 %v442_v4 }
  0x81   :  { %1695 = vmatpush3.msra.mxu0 %v768_v35  ;;  %1635 = vmatpush3.msra.mxu1 %v442_v4  ;;  %v757_v35 = vld [vmem:[#allocation4 + $0x18] sm:$0xff] }
  0x82   :  { %1566 = vmatmul.mubr.f32.gmra.mxu0 %v144_v37  ;;  %1696 = vmatprep.subr.mxu0 %v767_v38  ;;  %v427_v37 = vld [vmem:[#allocation9 + $0x88] sm:$0xff] }
  0x83   :  { %1568 = vmatprep.mubr.f32.mxu0 %v145_v39  ;;  %1697 = vmatpush3.msra.mxu0 %v767_v38  ;;  %v428_v38 = vld [vmem:[#allocation9 + $0x90] sm:$0xff]  ;;  %v429_v39 = vld [vmem:[#allocation9 + $0x98] sm:$0xff] }
  0x84   :  { %1698 = vmatprep.subr.mxu0 %v766_v40  ;;  %1637 = vmatmul.mubr.f32.vlgmr.msra.gmra.mxu1 %v411_v6 }
  0x85   :  { %1699 = vmatpush3.msra.mxu0 %v766_v40  ;;  %1639 = vmatprep.mubr.f32.mxu1 %v412_v7  ;;  %v430_v40 = vld [vmem:[#allocation9 + $0xa0] sm:$0xff] }
  0x86   :  { %1569 = vmatmul.mubr.f32.gmra.mxu0 %v146_v42  ;;  %1700 = vmatprep.subr.mxu0 %v765_v43  ;;  %v432_v42 = vld [vmem:[#allocation9 + $0xb0] sm:$0xff] }
  0x87   :  { %1571 = vmatprep.mubr.f32.mxu0 %v147_v44  ;;  %1701 = vmatpush3.msra.mxu0 %v765_v43  ;;  %v433_v43 = vld [vmem:[#allocation9 + $0xb8] sm:$0xff]  ;;  %v434_v44 = vld [vmem:[#allocation9 + $0xc0] sm:$0xff] }
  0x88   :  { %1702 = vmatprep.subr.mxu0 %v764_v45  ;;  %1640 = vmatmul.mubr.f32.gmra.mxu1 %v413_v10 }
  0x89   :  { %1703 = vmatpush3.msra.mxu0 %v764_v45  ;;  %1642 = vmatprep.mubr.f32.mxu1 %v414_v11  ;;  %v435_v45 = vld [vmem:[#allocation9 + $0xc8] sm:$0xff] }
  0x8a   :  { %1572 = vmatmul.mubr.f32.gmra.mxu0 %v148_v47  ;;  %1704 = vmatprep.subr.mxu0 %v763_v48  ;;  %v437_v47 = vld [vmem:[#allocation9 + $0xd8] sm:$0xff] }
  0x8b   :  { %1574 = vmatprep.mubr.f32.mxu0 %v149_v49  ;;  %1705 = vmatpush3.msra.mxu0 %v763_v48  ;;  %v438_v48 = vld [vmem:[#allocation9 + $0xe0] sm:$0xff]  ;;  %v439_v49 = vld [vmem:[#allocation9 + $0xe8] sm:$0xff] }
  0x8c   :  { %1706 = vmatprep.subr.mxu0 %v762_v50  ;;  %1643 = vmatmul.mubr.f32.gmra.mxu1 %v415_v14 }
  0x8d   :  { %1707 = vmatpush3.msra.mxu0 %v762_v50  ;;  %1645 = vmatprep.mubr.f32.mxu1 %v416_v15  ;;  %v440_v50 = vld [vmem:[#allocation9 + $0xf0] sm:$0xff] }
  0x8e   :  { %1575 = vmatmul.mubr.f32.gmra.mxu0 %v150_v52  ;;  %1708 = vmatprep.subr.mxu0 %v761_v53 }
  0x8f   :  { %1577 = vmatprep.mubr.f32.mxu0 %v151_v54  ;;  %1709 = vmatpush3.msra.mxu0 %v761_v53 }
  0x90   :  { %1710 = vmatprep.subr.mxu0 %v760_v55  ;;  %1646 = vmatmul.mubr.f32.gmra.mxu1 %v417_v18 }
  0x91   :  { %1711 = vmatpush3.msra.mxu0 %v760_v55  ;;  %1648 = vmatprep.mubr.f32.mxu1 %v418_v19 }
  0x92   :  { %1578 = vmatmul.mubr.f32.gmra.mxu0 %v152_v57  ;;  %1712 = vmatprep.subr.mxu0 %v759_v58 }
  0x93   :  { %1580 = vmatprep.mubr.f32.mxu0 %v153_v59  ;;  %1713 = vmatpush3.msra.mxu0 %v759_v58 }
  0x94   :  { %1714 = vmatprep.subr.mxu0 %v758_v60  ;;  %1649 = vmatmul.mubr.f32.gmra.mxu1 %v419_v22 }
  0x95   :  { %1715 = vmatpush3.msra.mxu0 %v758_v60  ;;  %1651 = vmatprep.mubr.f32.mxu1 %v420_v23 }
  0x96   :  { %1581 = vmatmul.mubr.f32.gmra.mxu0 %v154_v62 }
  0x97   :  { %1583 = vmatprep.mubr.f32.mxu0 %v155_v0 }
  0x98   :  { %1652 = vmatmul.mubr.f32.gmra.mxu1 %v421_v26 }
  0x99   :  { %1654 = vmatprep.mubr.f32.mxu1 %v422_v27 }
  0x9a   :  { %1584 = vmatmul.mubr.f32.gmra.mxu0 %v156_v3 }
  0x9b   :  { %1586 = vmatprep.mubr.f32.mxu0 %v157_v5 }
  0x9c   :  { %1655 = vmatmul.mubr.f32.gmra.mxu1 %v423_v30  ;;  %v2243_v30 = vld [vmem:[%s2398_s5] ss:$0 sm:$0xff] }
  0x9d   :  { %1657 = vmatprep.mubr.f32.mxu1 %v424_v31 }
  0x9e   :  { %1587 = vmatmul.mubr.f32.gmra.mxu0 %v158_v8 }
  0x9f   :  { %1589 = vmatprep.mubr.f32.mxu0 %v159_v9 }
  0xa0   :  { %1658 = vmatmul.mubr.f32.gmra.mxu1 %v425_v34 }
  0xa1   :  { %1660 = vmatprep.mubr.f32.mxu1 %v426_v36 }
  0xa2   :  { %1590 = vmatmul.mubr.f32.gmra.mxu0 %v160_v12 }
  0xa3   :  { %1592 = vmatprep.mubr.f32.mxu0 %v161_v13 }
  0xa4   :  { %1661 = vmatmul.mubr.f32.gmra.mxu1 %v427_v37 }
  0xa5   :  { %1663 = vmatprep.mubr.f32.mxu1 %v428_v38 }
  0xa6   :  { %1593 = vmatmul.mubr.f32.gmra.mxu0 %v162_v16 }
  0xa7   :  { %1595 = vmatprep.mubr.f32.mxu0 %v163_v17 }
  0xa8   :  { %1664 = vmatmul.mubr.f32.gmra.mxu1 %v429_v39 }
  0xa9   :  { %1666 = vmatprep.mubr.f32.mxu1 %v430_v40 }
  0xaa   :  { %1596 = vmatmul.mubr.f32.gmra.mxu0 %v164_v20 }
  0xab   :  { %1598 = vmatprep.mubr.f32.mxu0 %v165_v21 }
  0xac   :  { %1667 = vmatmul.mubr.f32.gmra.mxu1 %v431_v41  ;;  %v2263_v41 = vld [vmem:[%s2401_s8] ss:$0 sm:$0xff]  ;;  %s2096_s8 = smov [#allocation16]  }
  0xad   :  { %1669 = vmatprep.mubr.f32.mxu1 %v432_v42  ;;  %s1303_s30 = sshll.u32 %s2096_s8, 4  ;;  %s1304_s30 = int_to_ptr.vmem [resolvable:$true] %s1303_s30 }
  0xae   :  { %1599 = vmatmul.mubr.f32.gmra.mxu0 %v166_v24  ;;  %s2032_s1 = scalar_lea.vmem %s1304_s30, 512  ;;  %p2037_p8 = scmp.lt.s32.totalorder %s1304_s30, %s1304_s30 }
  0xaf   :  { %1601 = vmatprep.mubr.f32.mxu0 %v167_v25  ;;  %p2033_p7 = scmp.ne.s32.totalorder %s1304_s30, %s2032_s1  ;;  %p2038_p9 = scmp.lt.s32.totalorder %s2032_s1, %s2032_s1 }
  0xb0   :  { %1670 = vmatmul.mubr.f32.gmra.mxu1 %v433_v43 }
  0xb1   :  { %1672 = vmatprep.mubr.f32.mxu1 %v434_v44  ;;  %p2039_p10 = por %p2038_p9, %p2037_p8 }
  0xb2   :  { %1602 = vmatmul.mubr.f32.gmra.mxu0 %v168_v28 }
  0xb3   :  { %1716 = vmatprep.mubr.f32.mxu0 %v754_v29  ;;  %p2040_p11 = pnand %p2039_p10, %p2033_p7 }
  0xb4   :  { %1673 = vmatmul.mubr.f32.gmra.mxu1 %v435_v45 }
  0xb5   :  { %1675 = vmatprep.mubr.f32.mxu1 %v436_v46 }
  0xb6   :  { %1717 = vmatmul.mubr.f32.vlgmr.msra.gmra.mxu0 %v755_v32 }
  0xb7   :  { %1719 = vmatprep.mubr.f32.mxu0 %v756_v33 }
  0xb8   :  { %1676 = vmatmul.mubr.f32.gmra.mxu1 %v437_v47 }
  0xb9   :  { %1678 = vmatprep.mubr.f32.mxu1 %v438_v48 }
  0xba   :  { %1720 = vmatmul.mubr.f32.gmra.mxu0 %v757_v35 }
  0xbc   :  { %1679 = vmatmul.mubr.f32.gmra.mxu1 %v439_v49 }
  0xbd   :  { %1681 = vmatprep.mubr.f32.mxu1 %v440_v50 }
  0xc0   :  { %1682 = vmatmul.mubr.f32.gmra.mxu1 %v441_v51 }
 0x136   :  { %v2192_v52 = vpop.f32.mrf.mxu0 }
 0x138   :  { %v2194_v53 = vpop.f32.mrf.mxu0 }
 0x13a   :  { %v2196_v54 = vpop.f32.mrf.mxu0 }
 0x13c   :  { %v2198_v55 = vpop.f32.mrf.mxu0 }
 0x13e   :  { %v2200_v56 = vpop.f32.mrf.mxu0 }
 0x140   :  { %v2202_v57 = vpop.f32.mrf.mxu0 }
 0x142   :  { %v1567_v58 = vpop.f32.mrf.mxu0 }
 0x144   :  { %v281_v59 = vpop.f32.mrf.mxu0  ;;  %v2212_v8 = vpop.f32.mrf.mxu1 }
 0x146   :  { %v1570_v60 = vpop.f32.mrf.mxu0  ;;  %v2216_v10 = vpop.f32.mrf.mxu1 }
 0x148   :  { %v291_v61 = vpop.f32.mrf.mxu0  ;;  %v2220_v12 = vpop.f32.mrf.mxu1 }
 0x14a   :  { %v1573_v62 = vpop.f32.mrf.mxu0  ;;  %v2224_v14 = vpop.f32.mrf.mxu1 }
 0x14c   :  { %v301_v63 = vpop.f32.mrf.mxu0  ;;  %v2228_v16 = vpop.f32.mrf.mxu1 }
 0x14e   :  { %v1576_v0 = vpop.f32.mrf.mxu0  ;;  %v2230_v18 = vpop.f32.mrf.mxu1 }
 0x150   :  { %v311_v1 = vpop.f32.mrf.mxu0  ;;  %v2234_v21 = vpop.f32.mrf.mxu1 }
 0x152   :  { %v1579_v2 = vpop.f32.mrf.mxu0  ;;  %v2236_v24 = vpop.f32.mrf.mxu1 }
 0x153   :  { %1722 = vmatprep.subr.mxu1 %v1579_v2 }
 0x154   :  { %v321_v3 = vpop.f32.mrf.mxu0  ;;  %1723 = vmatpush3.xpose.msra.mxu1 %v1579_v2  ;;  %v2238_v27 = vpop.f32.mrf.mxu1 }
 0x155   :  { %1724 = vmatprep.subr.mxu1 %v321_v3  ;;  %v577_v51 = vadd.f32 %v2238_v27, %v2263_v41  ;;  %v1051_v27 = vld [vmem:[#allocation10 + $0x6] sm:$0x3] }
 0x156   :  { %v2204_v4 = vpop.f32.mrf.mxu0  ;;  %v2245_v31 = vpop.f32.mrf.mxu1  ;;  %vm1055_vm5 = vnez %v1051_v27 }
 0x158   :  { %v2206_v5 = vpop.f32.mrf.mxu0  ;;  %1725 = vmatpush3.xpose.msra.mxu1 %v321_v3  ;;  %v1653_v35 = vpop.f32.mrf.mxu1 }
 0x159   :  { %1726 = vmatprep.subr.mxu1 %v1576_v0  ;;  %v587_v49 = vadd.f32 %v1653_v35, %v2263_v41 }
 0x15a   :  { %v2208_v6 = vpop.f32.mrf.mxu0  ;;  %v581_v38 = vpop.f32.mrf.mxu1 }
 0x15b   :  { %v582_v50 = vadd.f32 %v2263_v41, %v581_v38 }
 0x15c   :  { %v2210_v7 = vpop.f32.mrf.mxu0  ;;  %1727 = vmatpush3.xpose.msra.mxu1 %v1576_v0  ;;  %v1656_v39 = vpop.f32.mrf.mxu1 }
 0x15d   :  { %1728 = vmatprep.subr.mxu1 %v311_v1  ;;  %v597_v47 = vadd.f32 %v1656_v39, %v2263_v41 }
 0x15e   :  { %v2214_v9 = vpop.f32.mrf.mxu0  ;;  %v591_v40 = vpop.f32.mrf.mxu1 }
 0x15f   :  { %v592_v48 = vadd.f32 %v2263_v41, %v591_v40 }
 0x160   :  { %v2218_v11 = vpop.f32.mrf.mxu0  ;;  %1729 = vmatpush3.xpose.msra.mxu1 %v311_v1  ;;  %v1659_v42 = vpop.f32.mrf.mxu1 }
 0x161   :  { %1730 = vmatprep.subr.mxu1 %v1573_v62  ;;  %v607_v43 = vadd.f32 %v1659_v42, %v2263_v41 }
 0x162   :  { %v2222_v13 = vpop.f32.mrf.mxu0  ;;  %v601_v44 = vpop.f32.mrf.mxu1 }
 0x163   :  { %v602_v46 = vadd.f32 %v2263_v41, %v601_v44 }
 0x164   :  { %v2226_v15 = vpop.f32.mrf.mxu0  ;;  %1731 = vmatpush3.xpose.msra.mxu1 %v1573_v62  ;;  %v2315_v62 = vpop.f32.mrf.mxu1 }
 0x165   :  { %1732 = vmatprep.subr.mxu1 %v301_v63 }
 0x166   :  { %v1594_v17 = vpop.f32.mrf.mxu0 }
 0x168   :  { %v2232_v19 = vpop.f32.mrf.mxu0  ;;  %1733 = vmatpush3.xpose.msra.mxu1 %v301_v63  ;;  %v2317_v63 = vpop.f32.mrf.mxu1 }
 0x169   :  { %1734 = vmatprep.subr.mxu1 %v1570_v60 }
 0x16a   :  { %v1597_v20 = vpop.f32.mrf.mxu0  ;;  %v2319_v0 = vpop.f32.mrf.mxu1 }
 0x16c   :  { %v381_v22 = vpop.f32.mrf.mxu0  ;;  %1735 = vmatpush3.xpose.msra.mxu1 %v1570_v60  ;;  %v532_v60 = vadd.f32 %v2263_v41, %v2216_v10  ;;  %v2321_v1 = vpop.f32.mrf.mxu1 }
 0x16d   :  { %1736 = vmatprep.subr.mxu1 %v291_v61 }
 0x16e   :  { %v1600_v23 = vpop.f32.mrf.mxu0  ;;  %v2323_v2 = vpop.f32.mrf.mxu1 }
 0x170   :  { %v391_v25 = vpop.f32.mrf.mxu0  ;;  %1737 = vmatpush3.xpose.msra.mxu1 %v291_v61  ;;  %v2325_v3 = vpop.f32.mrf.mxu1 }
 0x171   :  { %1738 = vmatprep.subr.mxu1 %v1567_v58 }
 0x172   :  { %v1603_v26 = vpop.f32.mrf.mxu0 }
 0x173   :  { %1757 = vmatprep.subr.mxu0 %v1603_v26 }
 0x174   :  { %v401_v28 = vpop.f32.mrf.mxu0  ;;  %1739 = vmatpush3.xpose.msra.mxu1 %v1567_v58  ;;  %1758 = vmatpush3.xpose.msra.mxu0 %v1603_v26  ;;  %v542_v58 = vadd.f32 %v2263_v41, %v2224_v14  ;;  %v1048_v14 = vld [vmem:[#allocation10] sm:$0x3]  ;;  %v1050_v26 = vld [vmem:[#allocation10 + $0x4] sm:$0x3] }
 0x175   :  { %1740 = vmatprep.subr.mxu1 %v281_v59  ;;  %1759 = vmatprep.subr.mxu0 %v401_v28  ;;  %vm1052_vm0 = vnez %v1048_v14  ;;  %vm1054_vm4 = vnez %v1050_v26 }
 0x176   :  { %v1718_v29 = vpop.f32.mrf.mxu0 }
 0x177   :  { %v853_v45 = vadd.f32 %v1718_v29, %v2243_v30 }
 0x178   :  { %1741 = vmatpush3.xpose.msra.mxu1 %v281_v59  ;;  %1760 = vmatpush3.xpose.msra.mxu0 %v401_v28  ;;  %v847_v32 = vpop.f32.mrf.mxu0  ;;  %v537_v59 = vadd.f32 %v2212_v8, %v2263_v41 }
 0x179   :  { %1742 = vmatprep.subr.mxu1 %v2200_v56  ;;  %1761 = vmatprep.subr.mxu0 %v1600_v23  ;;  %v848_v33 = vadd.f32 %v2243_v30, %v847_v32 }
 0x17a   :  { %v2249_v34 = vpop.f32.mrf.mxu0 }
 0x17b   :  { %1754 = vmatprep.mubr.f32.mxu1 %v848_v33  ;;  %v863_v61 = vadd.f32 %v2249_v34, %v2243_v30 }
 0x17c   :  { %1743 = vmatpush3.xpose.msra.mxu1 %v2200_v56  ;;  %1762 = vmatpush3.xpose.msra.mxu0 %v1600_v23  ;;  %v857_v36 = vpop.f32.mrf.mxu0  ;;  %v552_v56 = vadd.f32 %v2263_v41, %v2230_v18 }
 0x17d   :  { %1744 = vmatprep.subr.mxu1 %v2202_v57  ;;  %1763 = vmatprep.subr.mxu0 %v391_v25  ;;  %v858_v37 = vadd.f32 %v2243_v30, %v857_v36 }
 0x17f   :  { %1789 = vmatprep.mubr.f32.mxu0 %v858_v37 }
 0x180   :  { %1745 = vmatpush3.xpose.msra.mxu1 %v2202_v57  ;;  %1764 = vmatpush3.xpose.msra.mxu0 %v391_v25  ;;  %v547_v57 = vadd.f32 %v2220_v12, %v2263_v41 }
 0x181   :  { %1746 = vmatprep.subr.mxu1 %v2196_v54  ;;  %1765 = vmatprep.subr.mxu0 %v1597_v20 }
 0x184   :  { %1747 = vmatpush3.xpose.msra.mxu1 %v2196_v54  ;;  %1766 = vmatpush3.xpose.msra.mxu0 %v1597_v20  ;;  %v562_v54 = vadd.f32 %v2263_v41, %v2236_v24 }
 0x185   :  { %1748 = vmatprep.subr.mxu1 %v2198_v55  ;;  %1767 = vmatprep.subr.mxu0 %v381_v22 }
 0x188   :  { %1749 = vmatpush3.xpose.msra.mxu1 %v2198_v55  ;;  %1768 = vmatpush3.xpose.msra.mxu0 %v381_v22  ;;  %v557_v55 = vadd.f32 %v2228_v16, %v2263_v41  ;;  %v2095_v16 = vmov 0  }
 0x189   :  { %1750 = vmatprep.subr.mxu1 %v2192_v52  ;;  %1769 = vmatprep.subr.mxu0 %v1594_v17  ;;  %v1058_v28 = vsel %vm1054_vm4, 16843009, %v2095_v16  ;;  %v1059_v30 = vsel %vm1055_vm5, 16843009, %v2095_v16 }
 0x18a   :  { %v1062_v29 = vunpack.c.0.s8 %v1058_v28  ;;  %v1063_v32 = vunpack.c.0.s8 %v1059_v30 }
 0x18c   :  { %1751 = vmatpush3.xpose.msra.mxu1 %v2192_v52  ;;  %1770 = vmatpush3.xpose.msra.mxu0 %v1594_v17  ;;  %v572_v52 = vadd.f32 %v2263_v41, %v2245_v31  ;;  %v1056_v17 = vsel %vm1052_vm0, 16843009, %v2095_v16  ;;  %vm1066_vm6 = vcmp.ne.s32.totalorder %v1062_v29, 0  ;;  %vm1067_vm7 = vcmp.ne.s32.totalorder %v1063_v32, 0 }
 0x18d   :  { %1752 = vmatprep.subr.mxu1 %v2194_v53  ;;  %1771 = vmatprep.subr.mxu0 %v2232_v19 }
 0x190   :  { %1753 = vmatpush3.xpose.msra.mxu1 %v2194_v53  ;;  %1772 = vmatpush3.xpose.msra.mxu0 %v2232_v19  ;;  %v567_v53 = vadd.f32 %v2234_v21, %v2263_v41  ;;  %v1060_v19 = vunpack.c.0.s8 %v1056_v17 }
 0x191   :  { %1773 = vmatprep.subr.mxu0 %v2222_v13  ;;  %1792 = vmatprep.subr.mxu1 %v607_v43 }
 0x192   :  { %vm1064_vm2 = vcmp.ne.s32.totalorder %v1060_v19, 0 }
 0x193   :  { %1755 = vmatmul.mubr.f32.vlgmr.msra.gmra.mxu1 %v853_v45 }
 0x194   :  { %1774 = vmatpush3.xpose.msra.mxu0 %v2222_v13  ;;  %1793 = vmatpush3.msra.mxu1 %v607_v43 }
 0x195   :  { %1775 = vmatprep.subr.mxu0 %v2226_v15  ;;  %1794 = vmatprep.subr.mxu1 %v602_v46 }
 0x196   :  { %1795 = vmatpush3.msra.mxu1 %v602_v46 }
 0x197   :  { %1796 = vmatprep.subr.mxu1 %v597_v47 }
 0x198   :  { %1776 = vmatpush3.xpose.msra.mxu0 %v2226_v15  ;;  %1797 = vmatpush3.msra.mxu1 %v597_v47  ;;  %v1049_v15 = vld [vmem:[#allocation10 + $0x2] sm:$0x3] }
 0x199   :  { %1777 = vmatprep.subr.mxu0 %v2214_v9  ;;  %1798 = vmatprep.subr.mxu1 %v592_v48  ;;  %vm1053_vm1 = vnez %v1049_v15 }
 0x19a   :  { %1799 = vmatpush3.msra.mxu1 %v592_v48  ;;  %v1057_v20 = vsel %vm1053_vm1, 16843009, %v2095_v16 }
 0x19b   :  { %1800 = vmatprep.subr.mxu1 %v587_v49  ;;  %v1061_v22 = vunpack.c.0.s8 %v1057_v20 }
 0x19c   :  { %1778 = vmatpush3.xpose.msra.mxu0 %v2214_v9  ;;  %1801 = vmatpush3.msra.mxu1 %v587_v49 }
 0x19d   :  { %1779 = vmatprep.subr.mxu0 %v2218_v11  ;;  %1802 = vmatprep.subr.mxu1 %v582_v50  ;;  %vm1065_vm3 = vcmp.ne.s32.totalorder %v1061_v22, 0 }
 0x19e   :  { %1803 = vmatpush3.msra.mxu1 %v582_v50 }
 0x19f   :  { %1804 = vmatprep.subr.mxu1 %v577_v51 }
 0x1a0   :  { %1780 = vmatpush3.xpose.msra.mxu0 %v2218_v11  ;;  %1805 = vmatpush3.msra.mxu1 %v577_v51 }
 0x1a1   :  { %1781 = vmatprep.subr.mxu0 %v2208_v6  ;;  %1806 = vmatprep.subr.mxu1 %v572_v52 }
 0x1a2   :  { %1807 = vmatpush3.msra.mxu1 %v572_v52 }
 0x1a3   :  { %1808 = vmatprep.subr.mxu1 %v567_v53 }
 0x1a4   :  { %1782 = vmatpush3.xpose.msra.mxu0 %v2208_v6  ;;  %1809 = vmatpush3.msra.mxu1 %v567_v53 }
 0x1a5   :  { %1783 = vmatprep.subr.mxu0 %v2210_v7  ;;  %1810 = vmatprep.subr.mxu1 %v562_v54 }
 0x1a6   :  { %1811 = vmatpush3.msra.mxu1 %v562_v54 }
 0x1a7   :  { %1812 = vmatprep.subr.mxu1 %v557_v55 }
 0x1a8   :  { %1784 = vmatpush3.xpose.msra.mxu0 %v2210_v7  ;;  %1813 = vmatpush3.msra.mxu1 %v557_v55 }
 0x1a9   :  { %1785 = vmatprep.subr.mxu0 %v2204_v4  ;;  %1814 = vmatprep.subr.mxu1 %v552_v56 }
 0x1aa   :  { %1815 = vmatpush3.msra.mxu1 %v552_v56 }
 0x1ab   :  { %1816 = vmatprep.subr.mxu1 %v547_v57 }
 0x1ac   :  { %1786 = vmatpush3.xpose.msra.mxu0 %v2204_v4  ;;  %1817 = vmatpush3.msra.mxu1 %v547_v57  ;;  %v2327_v4 = vpop.f32.mrf.mxu1 }
 0x1ad   :  { %1787 = vmatprep.subr.mxu0 %v2206_v5  ;;  %1818 = vmatprep.subr.mxu1 %v542_v58 }
 0x1ae   :  { %1819 = vmatpush3.msra.mxu1 %v542_v58 }
 0x1af   :  { %1820 = vmatprep.subr.mxu1 %v537_v59 }
 0x1b0   :  { %1788 = vmatpush3.xpose.msra.mxu0 %v2206_v5  ;;  %1821 = vmatpush3.msra.mxu1 %v537_v59  ;;  %v2329_v5 = vpop.f32.mrf.mxu1 }
 0x1b1   :  { %1822 = vmatprep.subr.mxu1 %v532_v60  ;;  %v642_v15 = vadd.f32 %v2263_v41, %v2329_v5  ;;  %v622_v5 = vadd.f32 %v2263_v41, %v2321_v1 }
 0x1b2   :  { %1823 = vmatpush3.msra.mxu1 %v532_v60  ;;  %v2331_v6 = vpop.f32.mrf.mxu1 }
 0x1b3   :  { %1790 = vmatmul.mubr.f32.vlgmr.msra.gmra.mxu0 %v863_v61 }
 0x1b4   :  { %v2333_v7 = vpop.f32.mrf.mxu1 }
 0x1b6   :  { %v2335_v8 = vpop.f32.mrf.mxu1 }
 0x1b8   :  { %v2337_v9 = vpop.f32.mrf.mxu1 }
 0x1b9   :  { %v662_v14 = vadd.f32 %v2263_v41, %v2337_v9 }
 0x1ba   :  { %v2339_v10 = vpop.f32.mrf.mxu1 }
 0x1bb   :  { %v677_v60 = vadd.f32 %v2339_v10, %v2263_v41  ;;  %v657_v10 = vadd.f32 %v2331_v6, %v2263_v41  ;;  %v637_v6 = vadd.f32 %v2323_v2, %v2263_v41  ;;  %v617_v2 = vadd.f32 %v2315_v62, %v2263_v41 }
 0x1bc   :  { %v2341_v11 = vpop.f32.mrf.mxu1 }
 0x1bd   :  { %v672_v61 = vadd.f32 %v2263_v41, %v2341_v11  ;;  %v652_v11 = vadd.f32 %v2263_v41, %v2333_v7  ;;  %v632_v7 = vadd.f32 %v2263_v41, %v2325_v3  ;;  %v612_v3 = vadd.f32 %v2263_v41, %v2317_v63 }
 0x1be   :  { %v1683_v12 = vpop.f32.mrf.mxu1 }
 0x1bf   :  { %v2344_v13 = vadd.f32 %v1683_v12, %v2263_v41  ;;  %v667_v12 = vadd.f32 %v2335_v8, %v2263_v41  ;;  %v647_v8 = vadd.f32 %v2327_v4, %v2263_v41  ;;  %v627_v4 = vadd.f32 %v2319_v0, %v2263_v41 }
 0x1c0   :  { %v681_v18 = vpop.f32.mrf.mxu1 }
 0x1c1   :  { %1827 = vmatprep.subr.mxu1 %v2344_v13  ;;  %v682_v59 = vadd.f32 %v2263_v41, %v681_v18 }
 0x253   :  { %v1756_v21 = vpop.f32.mrf.mxu1 }
 0x254   :  { %v1069_v25 = vsel %vm1065_vm3, -1e+30, %v1756_v21 }
 0x255   :  { %v964_v23 = vpop.f32.mrf.mxu1 }
 0x256   :  { %v1068_v24 = vsel %vm1064_vm2, -1e+30, %v964_v23 }
 0x257   :  { %1072 = vmax.xlane.f32.xlu0 %v1068_v24 }
 0x25b   :  { %1074 = vmax.xlane.f32.xlu0 %v1069_v25 }
 0x273   :  { %v1791_v31 = vpop.f32.mrf.mxu0 }
 0x274   :  { %v1071_v35 = vsel %vm1067_vm7, -1e+30, %v1791_v31 }
 0x275   :  { %v1039_v33 = vpop.f32.mrf.mxu0 }
 0x276   :  { %v1070_v34 = vsel %vm1066_vm6, -1e+30, %v1039_v33 }
 0x277   :  { %1076 = vmax.xlane.f32.xlu1 %v1070_v34 }
 0x27b   :  { %1078 = vmax.xlane.f32.xlu1 %v1071_v35 }
 0x2e0   :  { %v1073_v36 = vpop.xlane.xlu0 %1072 }
 0x2e1   :  { %v1080_v37 = vsub.f32 %v1068_v24, %v1073_v36 }
 0x2e3   :  { %v1084_v38 = vmul.f32 1.442695, %v1080_v37 }
 0x2e4   :  { %v1075_v39 = vpop.xlane.xlu0 %1074 }
 0x2e5   :  { %1876 = vpow2.f32 %v1084_v38  ;;  %v1081_v40 = vsub.f32 %v1069_v25, %v1075_v39 }
 0x2e7   :  { %v1086_v42 = vmul.f32 1.442695, %v1081_v40 }
 0x2e9   :  { %1878 = vpow2.f32 %v1086_v42 }
 0x2f2   :  { %v1877_v43 = vpop.eup %1876 }
 0x2f3   :  { %1092 = vadd.xlane.f32.xlu0 %v1877_v43 }
 0x2f6   :  { %v1879_v44 = vpop.eup %1878 }
 0x2f7   :  { %1094 = vadd.xlane.f32.xlu1 %v1879_v44 }
 0x300   :  { %v1077_v45 = vpop.xlane.xlu1 %1076 }
 0x301   :  { %v1082_v46 = vsub.f32 %v1070_v34, %v1077_v45 }
 0x303   :  { %v1088_v47 = vmul.f32 1.442695, %v1082_v46 }
 0x304   :  { %v1079_v48 = vpop.xlane.xlu1 %1078 }
 0x305   :  { %1880 = vpow2.f32 %v1088_v47  ;;  %v1083_v49 = vsub.f32 %v1071_v35, %v1079_v48 }
 0x307   :  { %v1090_v50 = vmul.f32 1.442695, %v1083_v49 }
 0x309   :  { %1882 = vpow2.f32 %v1090_v50 }
 0x312   :  { %v1881_v51 = vpop.eup %1880 }
 0x313   :  { %1096 = vadd.xlane.f32.xlu0 %v1881_v51 }
 0x316   :  { %v2347_v52 = vpop.eup %1882 }
 0x317   :  { %1098 = vadd.xlane.f32.xlu1 %v2347_v52 }
 0x37c   :  { %v1093_v53 = vpop.xlane.xlu0 %1092 }
 0x37d   :  { %1884 = vrcp.f32 %v1093_v53 }
 0x380   :  { %v1095_v54 = vpop.xlane.xlu1 %1094 }
 0x381   :  { %1886 = vrcp.f32 %v1095_v54 }
 0x38a   :  { %v1885_v55 = vpop.eup %1884 }
 0x38b   :  { %v1101_v56 = vmul.f32 %v1885_v55, %v1877_v43 }
 0x38d   :  { %1824 = vmatprep.mubr.f32.mxu1 %v1101_v56  ;;  %1290 = vst [vmem:[#allocation16] sm:$0xff] %v1101_v56 }
 0x38e   :  { %v1887_v57 = vpop.eup %1886 }
 0x38f   :  { %v1103_v58 = vmul.f32 %v1887_v57, %v1879_v44 }
 0x391   :  { %1825 = vmatmul.mubr.f32.vlgmr.msra.gmra.mxu1 %v1103_v58  ;;  %1291 = vst [vmem:[#allocation16 + $0x8] sm:$0xff] %v1103_v58 }
 0x392   :  { %1828 = vmatpush3.msra.mxu1 %v2344_v13 }
 0x393   :  { %1829 = vmatprep.subr.mxu1 %v682_v59 }
 0x394   :  { %1830 = vmatpush3.msra.mxu1 %v682_v59 }
 0x395   :  { %1831 = vmatprep.subr.mxu1 %v677_v60 }
 0x396   :  { %1832 = vmatpush3.msra.mxu1 %v677_v60 }
 0x397   :  { %1833 = vmatprep.subr.mxu1 %v672_v61 }
 0x398   :  { %1834 = vmatpush3.msra.mxu1 %v672_v61 }
 0x399   :  { %1835 = vmatprep.subr.mxu1 %v667_v12 }
 0x39a   :  { %1836 = vmatpush3.msra.mxu1 %v667_v12 }
 0x39b   :  { %1837 = vmatprep.subr.mxu1 %v662_v14 }
 0x39c   :  { %1838 = vmatpush3.msra.mxu1 %v662_v14  ;;  %v1097_v13 = vpop.xlane.xlu0 %1096 }
 0x39d   :  { %1839 = vmatprep.subr.mxu1 %v657_v10  ;;  %1888 = vrcp.f32 %v1097_v13 }
 0x39e   :  { %1840 = vmatpush3.msra.mxu1 %v657_v10 }
 0x39f   :  { %1841 = vmatprep.subr.mxu1 %v652_v11 }
 0x3a0   :  { %1842 = vmatpush3.msra.mxu1 %v652_v11  ;;  %v1099_v9 = vpop.xlane.xlu1 %1098 }
 0x3a1   :  { %1890 = vrcp.f32 %v1099_v9  ;;  %1843 = vmatprep.subr.mxu1 %v647_v8 }
 0x3a2   :  { %1844 = vmatpush3.msra.mxu1 %v647_v8 }
 0x3a3   :  { %1845 = vmatprep.subr.mxu1 %v642_v15 }
 0x3a4   :  { %1846 = vmatpush3.msra.mxu1 %v642_v15 }
 0x3a5   :  { %1847 = vmatprep.subr.mxu1 %v637_v6 }
 0x3a6   :  { %1848 = vmatpush3.msra.mxu1 %v637_v6 }
 0x3a7   :  { %1849 = vmatprep.subr.mxu1 %v632_v7 }
 0x3a8   :  { %1850 = vmatpush3.msra.mxu1 %v632_v7 }
 0x3a9   :  { %1851 = vmatprep.subr.mxu1 %v627_v4 }
 0x3aa   :  { %v1889_v16 = vpop.eup %1888  ;;  %1852 = vmatpush3.msra.mxu1 %v627_v4 }
 0x3ab   :  { %1853 = vmatprep.subr.mxu1 %v622_v5  ;;  %v1105_v17 = vmul.f32 %v1889_v16, %v1881_v51 }
 0x3ac   :  { %1854 = vmatpush3.msra.mxu1 %v622_v5 }
 0x3ad   :  { %1855 = vmatprep.subr.mxu1 %v617_v2  ;;  %1859 = vmatprep.mubr.f32.mxu1 %v1105_v17  ;;  %1292 = vst [vmem:[#allocation16 + $0x10] sm:$0xff] %v1105_v17 }
 0x3ae   :  { %v1891_v0 = vpop.eup %1890  ;;  %1856 = vmatpush3.msra.mxu1 %v617_v2 }
 0x3af   :  { %1857 = vmatprep.subr.mxu1 %v612_v3  ;;  %v1107_v1 = vmul.f32 %v1891_v0, %v2347_v52 }
 0x3b0   :  { %1858 = vmatpush3.msra.mxu1 %v612_v3 }
 0x3b1   :  { %1860 = vmatmul.mubr.f32.vlgmr.msra.gmra.mxu1 %v1107_v1  ;;  %1293 = vst [vmem:[#allocation16 + $0x18] sm:$0xff] %v1107_v1 }
 0x3b2   :  { %2043 = shalt.err (!%p2040_p11)
}
 0x3b3   :  { %1309 = dma.vmem_to_hbm [thread:$0]  %s1304_s30, 512, %s2402_s9, [#allocation6], %s2086_s18, %s2086_s18, %s2087_s19  }
 0x3b4   :  { %s2097_s3 = smov [#allocation17]  }
 0x3b5   :  { %s1315_s13 = sshll.u32 %s2097_s3, 4  ;;  %s1316_s13 = int_to_ptr.vmem [resolvable:$true] %s1315_s13 }
 0x3b6   :  { %s2052_s14 = scalar_lea.vmem %s1316_s13, 512  ;;  %p2057_p13 = scmp.lt.s32.totalorder %s1316_s13, %s1316_s13 }
 0x3b7   :  { %p2053_p12 = scmp.ne.s32.totalorder %s1316_s13, %s2052_s14  ;;  %p2058_p0 = scmp.lt.s32.totalorder %s2052_s14, %s2052_s14 }
 0x3b9   :  { %p2059_p1 = por %p2058_p0, %p2057_p13 }
 0x3bb   :  { %p2060_p2 = pnand %p2059_p1, %p2053_p12 }
 0x451   :  { %v1826_v41 = vpop.f32.mrf.mxu1 }
 0x452   :  { %1295 = vst [vmem:[#allocation17 + $0x8] sm:$0xff] %v1826_v41 }
 0x453   :  { %v1206_v62 = vpop.f32.mrf.mxu1 }
 0x454   :  { %1294 = vst [vmem:[#allocation17] sm:$0xff] %v1206_v62 }
 0x471   :  { %v1861_v63 = vpop.f32.mrf.mxu1 }
 0x472   :  { %1297 = vst [vmem:[#allocation17 + $0x18] sm:$0xff] %v1861_v63 }
 0x473   :  { %v1281_v18 = vpop.f32.mrf.mxu1 }
 0x474   :  { %1296 = vst [vmem:[#allocation17 + $0x10] sm:$0xff] %v1281_v18 }
 0x475   :  { %2063 = shalt.err (!%p2060_p2)
}
 0x476   :  { %1321 = dma.vmem_to_hbm [thread:$0]  %s1316_s13, 512, %s2403_s10, [#allocation18], %s2086_s18, %s2086_s18, %s2087_s19  }
 0x477   :  { %2080 = dma.done.wait [#allocation6], 512  }
 0x478   :  { %2081 = vsyncadd [#allocation6], 4294966784 }
 0x479   :  { %2082 = dma.done.wait [#allocation18], 512  }
 0x47a   :  { %2083 = vsyncadd [#allocation18], 4294966784 }
 0x47b   :  { %1328 = vsyncpa [#allocation5], 1 }
 0x47c   :  { %1329 = vsyncpa [#allocation8], 1 }
 0x47d   :  { %1330 = vsyncpa [#allocation11], 1 }
 0x47e   :  { %1331 = vsyncpa [#allocation14], 1 }
 0x47f   :  { %1332 = vsyncpa [#allocation6], 1 }
 0x480   :  { %1333 = vsyncpa [#allocation18], 1 }

</bundles_post_ra>
